<compile_context>
chip_gen: v6e
topology: v6e:2x2x1
jax: 0.10.0
libtpu: 0.0.40
codegen_flags: <defaults>
</compile_context>

<pallas_src>
import jax
import jax.numpy as jnp
from jax.experimental import pallas as pl
from jax.experimental.pallas import tpu as pltpu


def _sigmoid_kernel(x_ref, o_ref):
    x = x_ref[...].astype(jnp.float32)
    # sigma(x) = 0.5 * tanh(x/2) + 0.5 : mathematically exact, numerically
    # stable (no exp overflow), one EUP push per element (tanh) with the
    # mul/add riding the VALU slots -> kernel stays DMA-bound.
    o_ref[...] = (0.5 * jnp.tanh(0.5 * x) + 0.5).astype(o_ref.dtype)


def _cost(n, itemsize):
    return pl.CostEstimate(
        flops=4 * n, transcendentals=n, bytes_accessed=2 * n * itemsize
    )


def _round_up(a, b):
    return ((a + b - 1) // b) * b


def _sigmoid_single_block(x2d):
    """One whole-array block, no grid (tiny inputs / <128-elem tails)."""
    n = x2d.size
    itemsize = jnp.dtype(x2d.dtype).itemsize
    return pl.pallas_call(
        _sigmoid_kernel,
        out_shape=jax.ShapeDtypeStruct(x2d.shape, x2d.dtype),
        cost_estimate=_cost(n, itemsize),
    )(x2d)


def _sigmoid_grid(x2d, max_row_tile):
    """Tiled streaming kernel over a lane-dense (rows, lanes) slab."""
    rows, lanes = x2d.shape
    n = x2d.size
    itemsize = jnp.dtype(x2d.dtype).itemsize

    # Keep >= ~8 grid steps when possible (pipelining + both v7x TCs),
    # row_tile always a multiple of 8 (sublane constraint).
    row_tile = min(max_row_tile, max(8, _round_up(pl.cdiv(rows, 8), 8)))
    grid = (pl.cdiv(rows, row_tile),)  # ragged last block handled by masking

    return pl.pallas_call(
        _sigmoid_kernel,
        out_shape=jax.ShapeDtypeStruct(x2d.shape, x2d.dtype),
        grid_spec=pltpu.PrefetchScalarGridSpec(
            num_scalar_prefetch=0,
            grid=grid,
            in_specs=[pl.BlockSpec((row_tile, lanes), lambda i: (i, 0))],
            out_specs=pl.BlockSpec((row_tile, lanes), lambda i: (i, 0)),
        ),
        compiler_params=pltpu.CompilerParams(
            dimension_semantics=("parallel",),   # shards across v7x's 2 TCs
            vmem_limit_bytes=48 << 20,           # < v7x 64 MiB physical VMEM
        ),
        cost_estimate=_cost(n, itemsize),
    )(x2d)


def sigmoid_forward(x, *, max_row_tile=1024, small_bytes=1 << 20):
    """Elementwise sigmoid via Pallas TPU kernels. Any shape, same dtype out."""
    orig_shape = x.shape
    dtype = x.dtype
    n = x.size
    if n == 0:
        return x
    itemsize = jnp.dtype(dtype).itemsize

    flat = x.reshape(-1)  # contiguous reshape: no HBM copy

    # Widest lane width that divides n exactly (zero-copy lane-dense view).
    lanes = next((l for l in (1024, 512, 256, 128) if n % l == 0), None)

    # ---- Small fast path: one block, no grid. ------------------------------
    if n * itemsize <= small_bytes:
        x2d = flat.reshape(n // lanes, lanes) if lanes else flat.reshape(1, n)
        return _sigmoid_single_block(x2d).reshape(orig_shape)

    # ---- Rare ragged case (n % 128 != 0): bulk via grid, tiny tail apart. --
    if lanes is None:
        n_bulk = (n // 128) * 128
        bulk = sigmoid_forward(flat[:n_bulk],
                               max_row_tile=max_row_tile,
                               small_bytes=small_bytes)
        tail = _sigmoid_single_block(flat[n_bulk:].reshape(1, n - n_bulk))
        return jnp.concatenate([bulk.reshape(-1), tail.reshape(-1)]).reshape(
            orig_shape)

    # ---- Large path: lane-dense slab, big blocks, parallel grid. -----------
    x2d = flat.reshape(n // lanes, lanes)        # zero-copy view
    return _sigmoid_grid(x2d, max_row_tile).reshape(orig_shape)


if __name__ == "__main__":
    key = jax.random.PRNGKey(0)

    # NCHW input consistent with the module: batch=2, channels=4, spatial 16x16
    x_small = jax.random.normal(key, (2, 4, 16, 16), dtype=jnp.float32)
    out_small = jax.block_until_ready(sigmoid_forward(x_small))
    ref_small = 1.0 / (1.0 + jnp.exp(-x_small))
    assert out_small.shape == x_small.shape
    assert out_small.dtype == x_small.dtype
    assert jnp.max(jnp.abs(out_small - ref_small)) < 1e-5

    # Exercise the tiled (grid) path, including a ragged last row-block.
    k1, k2 = jax.random.split(key)
    x_big = jax.random.normal(k1, (2, 4, 256, 300), dtype=jnp.float32)
    out_big = jax.block_until_ready(sigmoid_forward(x_big))
    ref_big = 1.0 / (1.0 + jnp.exp(-x_big))
    assert out_big.shape == x_big.shape
    assert jnp.max(jnp.abs(out_big - ref_big)) < 1e-5

    # Saturation / odd-shape path: must be finite and exact at the rails.
    x_ext = jnp.array([[-1e4, -30.0, -1.0, 0.0, 1.0, 30.0, 1e4]],
                      dtype=jnp.float32)
    out_ext = jax.block_until_ready(sigmoid_forward(x_ext))
    ref_ext = 1.0 / (1.0 + jnp.exp(-x_ext))
    assert jnp.all(jnp.isfinite(out_ext))
    assert jnp.max(jnp.abs(out_ext - ref_ext)) < 1e-5

    # TODO(synk): backward (sigma * (1 - sigma) * dl_dx) not implemented;
    # only the forward pass was requested.
    print("KERNEL_OK")
</pallas_src>

<mosaic_0001>
module attributes {stable_mosaic.version = 11 : i64} {
  func.func @_sigmoid_kernel(%arg0: memref<2x1024xf32, #tpu.memory_space<vmem>>, %arg1: memref<2x1024xf32, #tpu.memory_space<vmem>>) attributes {dimension_semantics = [], scalar_prefetch = 0 : i64, scratch_operands = 0 : i64, tpu.core_type = #tpu.core_type<tc>} {
    %c0 = arith.constant 0 : index
    %c0_0 = arith.constant 0 : index
    %0 = vector.load %arg0[%c0, %c0_0] : memref<2x1024xf32, #tpu.memory_space<vmem>>, vector<2x1024xf32>
    %cst = arith.constant 5.000000e-01 : f32
    %1 = vector.broadcast %cst : f32 to vector<2x1024xf32>
    %2 = arith.mulf %1, %0 : vector<2x1024xf32>
    %3 = math.tanh %2 : vector<2x1024xf32>
    %cst_1 = arith.constant 5.000000e-01 : f32
    %4 = vector.broadcast %cst_1 : f32 to vector<2x1024xf32>
    %5 = arith.mulf %4, %3 : vector<2x1024xf32>
    %cst_2 = arith.constant 5.000000e-01 : f32
    %6 = vector.broadcast %cst_2 : f32 to vector<2x1024xf32>
    %7 = arith.addf %5, %6 : vector<2x1024xf32>
    %c0_3 = arith.constant 0 : index
    %c0_4 = arith.constant 0 : index
    %8 = vector.load %arg1[%c0_3, %c0_4] : memref<2x1024xf32, #tpu.memory_space<vmem>>, vector<2x1024xf32>
    tpu.vector_store %arg1[%c0_3, %c0_4], %7 {strides = array<i32>} : memref<2x1024xf32, #tpu.memory_space<vmem>>, vector<2x1024xf32>,
    return
  }
}

</mosaic_0001>

<bundles_post_ra>
// kernel: tpu_custom_call.1
= control target key start
LH: loop header
LB: loop body
LE: loop exit
PB: predicated region body
PF: predicated region fallthrough
CT: control target
= control target key end

     0   :  { %6 = vsyncpa [#allocation3], 0  ;;  %s116_s0 = inlined_call_operand.hbm [shape: f32[2,1024], index: 0, kind: input, shape index: {}]   ;;  %s117_s1 = inlined_call_operand.hbm [shape: f32[2,1024], index: 1, kind: output, shape index: {}]  }
   0x1   :  { %7 = vsyncpa [#allocation4], 0  ;;  %s98_s6 = smov [#allocation2]  }
   0x2   :  { %s14_s7 = sshll.u32 %s98_s6, 4  ;;  %s15_s7 = int_to_ptr.vmem [resolvable:$true] %s14_s7 }
   0x3   :  { %s62_s8 = scalar_lea.vmem %s15_s7, 256  ;;  %p67_p1 = scmp.lt.s32.totalorder %s15_s7, %s15_s7 }
   0x4   :  { %p63_p0 = scmp.ne.s32.totalorder %s15_s7, %s62_s8  ;;  %p68_p2 = scmp.lt.s32.totalorder %s62_s8, %s62_s8 }
   0x6   :  { %p69_p3 = por %p68_p2, %p67_p1 }
   0x8   :  { %p70_p4 = pnand %p69_p3, %p63_p0 }
   0xa   :  { %73 = shalt.err (!%p70_p4)
}
   0xb   :  { %17 = dma.hbm_to_vmem [thread:$0]  %s116_s0, 256, %s15_s7, [#allocation3]  }
   0xc   :  { %94 = dma.done.wait [#allocation3], 256  }
   0xd   :  { %95 = vsyncadd [#allocation3], 4294967040  ;;  %v21_v0 = vld [vmem:[#allocation2] sm:$0xff]  ;;  %v22_v1 = vld [vmem:[#allocation2 + $0x8] sm:$0xff]  ;;  %s99_s11 = smov [#allocation5]  }
   0xe   :  { %v23_v2 = vmul.f32 0.5, %v21_v0  ;;  %v24_v3 = vmul.f32 0.5, %v22_v1  ;;  %s39_s12 = sshll.u32 %s99_s11, 4  ;;  %s40_s12 = int_to_ptr.vmem [resolvable:$true] %s39_s12 }
   0xf   :  { %s74_s0 = scalar_lea.vmem %s40_s12, 256  ;;  %p79_p6 = scmp.lt.s32.totalorder %s40_s12, %s40_s12 }
  0x10   :  { %50 = vtanh.f32 %v23_v2  ;;  %p75_p5 = scmp.ne.s32.totalorder %s40_s12, %s74_s0  ;;  %p80_p7 = scmp.lt.s32.totalorder %s74_s0, %s74_s0 }
  0x11   :  { %52 = vtanh.f32 %v24_v3 }
  0x12   :  { %p81_p8 = por %p80_p7, %p79_p6 }
  0x14   :  { %p82_p9 = pnand %p81_p8, %p75_p5 }
  0x1d   :  { %v51_v4 = vpop.eup %50 }
  0x1e   :  { %v53_v5 = vpop.eup %52  ;;  %v27_v6 = vmul.f32 0.5, %v51_v4 }
  0x1f   :  { %v28_v7 = vmul.f32 0.5, %v53_v5 }
  0x20   :  { %v29_v8 = vadd.f32 0.5, %v27_v6 }
  0x21   :  { %v30_v9 = vadd.f32 0.5, %v28_v7 }
  0x22   :  { %31 = vst [vmem:[#allocation5] sm:$0xff] %v29_v8 }
  0x23   :  { %32 = vst [vmem:[#allocation5 + $0x8] sm:$0xff] %v30_v9 }
  0x24   :  { %85 = shalt.err (!%p82_p9)
}
  0x25   :  { %42 = dma.vmem_to_hbm [thread:$0]  %s40_s12, 256, %s117_s1, [#allocation4]  }
  0x26   :  { %96 = dma.done.wait [#allocation4], 256  }
  0x27   :  { %97 = vsyncadd [#allocation4], 4294967040 }
  0x28   :  { %46 = vsyncpa [#allocation3], 1 }
  0x29   :  { %47 = vsyncpa [#allocation4], 1 }

</bundles_post_ra>
